<compile_context>
chip_gen: v7x
topology: tpu7x:2x2x1
jax: 0.10.0
libtpu: 0.0.40
codegen_flags: <defaults>
</compile_context>

<pallas_src>
import functools

import jax
import jax.numpy as jnp
from jax.experimental import pallas as pl
from jax.experimental.pallas import tpu as pltpu


_FAST_PATH_MAX_BYTES = 512 * 1024  # below this a fused XLA slice wins outright


def _crop_kernel(x_ref, o_ref, *, r, c, h_out, w_out):
    # Pure VMEM copy: (nc_tile, H, W) -> (nc_tile, H_out, W_out).
    # Static slice -> on-chip relayout (XLU slot, which has slack in a copy kernel).
    o_ref[...] = x_ref[:, r:r + h_out, c:c + w_out]


def _sublane_multiple(dtype):
    # Sub-32-bit dtypes pack along sublanes: 8 for f32, 16 for bf16, 32 for i8.
    return max(8, 32 // jnp.dtype(dtype).itemsize)


def _padded_plane_bytes(h, w, dtype):
    """True VMEM footprint of one (h, w) plane after (sublane, 128) tiling."""
    sub = _sublane_multiple(dtype)
    h_p = pl.cdiv(h, sub) * sub
    w_p = pl.cdiv(w, 128) * 128
    return h_p * w_p * jnp.dtype(dtype).itemsize


def _tpu_vmem_and_cores():
    """(physical VMEM bytes per core, TensorCores per chip), safe fallbacks."""
    phys = None
    cores = 1
    try:
        info = pltpu.get_tpu_info()
        phys = (getattr(info, "vmem_capacity_bytes", None)
                or getattr(info, "vmem_size_bytes", None))
        cores = (getattr(info, "num_cores", None)
                 or getattr(info, "tensorcores_per_chip", None)
                 or getattr(info, "num_tensorcores", None)
                 or 1)
    except Exception:
        pass
    if not phys:
        phys = 64 * 1024 * 1024  # conservative fallback: v7x has 64 MiB per TC
    if not cores or cores < 1:
        cores = 1
    return int(phys), int(cores)


def _block_budget(phys_vmem):
    # Budget for the double-buffered in+out blocks, with headroom under
    # physical VMEM for Mosaic internal scratch.  ~28 MiB on v7x (64 MiB/TC);
    # capped at 28 MiB on v5e/v6e too -- already large enough that the
    # ~0.35 us/step pipeline overhead is fully amortized.
    return max(4 * 1024 * 1024,
               min(28 * 1024 * 1024, phys_vmem // 2 - 4 * 1024 * 1024))


def crop_layer(x, crop_set, *, force_pallas=False, max_block_bytes=None):
    """Pallas equivalent of CropLayer.forward. x: (N, C, H, W)."""
    r = -crop_set[0]
    c = -crop_set[1]
    assert r >= 0 and c >= 0
    N, C, H, W = x.shape
    # NOTE: PyTorch `a[k:-k]` with k == 0 is an EMPTY slice; we reproduce that
    # exactly: zero-size output when a crop amount is 0 (or the crop eats the
    # dim).  Do not "fix" this -- it matches the original module's semantics.
    H_out = max(H - 2 * r, 0) if r > 0 else 0
    W_out = max(W - 2 * c, 0) if c > 0 else 0
    if H_out == 0 or W_out == 0:
        return jnp.zeros((N, C, H_out, W_out), dtype=x.dtype)

    itemsize = jnp.dtype(x.dtype).itemsize
    total_in_bytes = N * C * H * W * itemsize
    if not force_pallas and total_in_bytes <= _FAST_PATH_MAX_BYTES:
        # pallas_call launch + pipeline setup exceeds the copy time for tiny
        # tensors (e.g. the 2x4x16x16 demo); XLA's fused slice wins outright.
        return x[:, :, r:r + H_out, c:c + W_out]

    NC = N * C
    phys_vmem, cores = _tpu_vmem_and_cores()
    budget = _block_budget(phys_vmem)
    if max_block_bytes is not None:
        budget = int(max_block_bytes)

    # Per-NC-element VMEM footprint with layout padding, default double-buffered.
    in_plane = _padded_plane_bytes(H, W, x.dtype)
    out_plane = _padded_plane_bytes(H_out, W_out, x.dtype)
    per_nc_db = 2 * (in_plane + out_plane)

    nc_tile = max(1, min(NC, budget // per_nc_db))
    if cores > 1 and NC >= cores:
        # Keep every TensorCore busy and avoid an odd trailing step (v7x).
        steps = max(pl.cdiv(NC, nc_tile), cores)
        steps = pl.cdiv(steps, cores) * cores
        nc_tile = pl.cdiv(NC, steps)
    num_steps = pl.cdiv(NC, nc_tile)

    # Deeper input buffering only pays off with many short steps; keep it
    # inside the budget (3 input buffers + 2 output buffers).
    in_block_bytes = nc_tile * in_plane
    out_block_bytes = nc_tile * out_plane
    use_deep_pipeline = (num_steps >= 8 and in_block_bytes < (1 << 20)
                         and 3 * in_block_bytes + 2 * out_block_bytes <= budget)

    # Explicit scoped-VMEM limit derived from physical VMEM -> safe on every
    # generation regardless of the per-gen scoped defaults (16/32/32 MiB).
    vmem_limit = min(max(budget, per_nc_db) + 8 * 1024 * 1024,
                     max(phys_vmem - 2 * 1024 * 1024, 16 * 1024 * 1024))

    # Free metadata reshape: contiguous NCHW -> (N*C, H, W).
    x3 = x.reshape(NC, H, W)

    kernel = functools.partial(_crop_kernel, r=r, c=c, h_out=H_out, w_out=W_out)

    in_spec_kwargs = {}
    if use_deep_pipeline:
        in_spec_kwargs["pipeline_mode"] = pl.Buffered(3)

    out3 = pl.pallas_call(
        kernel,
        out_shape=jax.ShapeDtypeStruct((NC, H_out, W_out), x.dtype),
        grid=(num_steps,),
        in_specs=[pl.BlockSpec((nc_tile, H, W), lambda i: (i, 0, 0),
                               **in_spec_kwargs)],
        out_specs=pl.BlockSpec((nc_tile, H_out, W_out), lambda i: (i, 0, 0)),
        compiler_params=pltpu.CompilerParams(
            dimension_semantics=("parallel",),
            vmem_limit_bytes=int(vmem_limit)),
        cost_estimate=pl.CostEstimate(
            flops=0,
            transcendentals=0,
            bytes_accessed=(NC * H * W + NC * H_out * W_out) * itemsize),
    )(x3)
    return out3.reshape(N, C, H_out, W_out)


if __name__ == "__main__":
    key = jax.random.PRNGKey(0)
    # Small shapes consistent with the module: batch=2, channels=4, spatial=16x16.
    x = jax.random.normal(key, (2, 4, 16, 16), dtype=jnp.float32)
    crop_set = (-2, -2)  # crops 2 rows/cols from each side

    # (a) default path: tiny tensor -> small-tensor fast path (plain slice).
    out_fast = crop_layer(x, crop_set)
    # (b) forced through the Pallas kernel to exercise the kernel itself.
    out_pallas = crop_layer(x, crop_set, force_pallas=True)
    jax.block_until_ready((out_fast, out_pallas))

    ref = x[:, :, 2:-2, 2:-2]
    assert out_fast.shape == (2, 4, 12, 12), out_fast.shape
    assert out_pallas.shape == (2, 4, 12, 12), out_pallas.shape
    assert jnp.array_equal(out_fast, ref), "fast path mismatch vs reference"
    assert jnp.array_equal(out_pallas, ref), "pallas path mismatch vs reference"

    # (c) awkwardly factored N*C + small block budget -> exercises the
    #     cdiv/ragged multi-step grid path (NC=14, nc_tile=4 -> 4 steps, last
    #     block partial along the leading axis).
    x2 = jax.random.normal(jax.random.PRNGKey(1), (2, 7, 32, 144),
                           dtype=jnp.float32)
    out2 = crop_layer(x2, (-1, -1), force_pallas=True,
                      max_block_bytes=512 * 1024)
    out2 = jax.block_until_ready(out2)
    ref2 = x2[:, :, 1:-1, 1:-1]
    assert out2.shape == ref2.shape, out2.shape
    assert jnp.array_equal(out2, ref2), "ragged-grid path mismatch vs reference"

    print("KERNEL_OK")
</pallas_src>

<mosaic_0001>
module attributes {stable_mosaic.version = 11 : i64} {
  func.func @_crop_kernel(%arg0: i32, %arg1: memref<8x16x16xf32, #tpu.memory_space<vmem>>, %arg2: memref<8x12x12xf32, #tpu.memory_space<vmem>>) attributes {dimension_semantics = [#tpu.dimension_semantics<parallel>], iteration_bounds = array<i64: 1>, scalar_prefetch = 0 : i64, scratch_operands = 0 : i64, tpu.core_type = #tpu.core_type<tc>, window_params = [{transform_indices = @transform_0, window_bounds = array<i64: 8, 16, 16>}, {transform_indices = @transform_1, window_bounds = array<i64: 8, 12, 12>}]} {
    %c0 = arith.constant 0 : index
    %c2 = arith.constant 2 : index
    %c2_0 = arith.constant 2 : index
    %0 = vector.load %arg1[%c0, %c2, %c2_0] : memref<8x16x16xf32, #tpu.memory_space<vmem>>, vector<8x12x12xf32>
    %c0_1 = arith.constant 0 : index
    %c0_2 = arith.constant 0 : index
    %c0_3 = arith.constant 0 : index
    %1 = vector.load %arg2[%c0_1, %c0_2, %c0_3] : memref<8x12x12xf32, #tpu.memory_space<vmem>>, vector<8x12x12xf32>
    tpu.vector_store %arg2[%c0_1, %c0_2, %c0_3], %0 {strides = array<i32>} : memref<8x12x12xf32, #tpu.memory_space<vmem>>, vector<8x12x12xf32>,
    return
  }
  func.func @transform_0(%arg0: i32) -> (i32, i32, i32) {
    %c0_i32 = arith.constant 0 : i32
    %c0_i32_0 = arith.constant 0 : i32
    %c0_i32_1 = arith.constant 0 : i32
    return %arg0, %c0_i32, %c0_i32_0 : i32, i32, i32
  }
  func.func @transform_1(%arg0: i32) -> (i32, i32, i32) {
    %c0_i32 = arith.constant 0 : i32
    %c0_i32_0 = arith.constant 0 : i32
    %c0_i32_1 = arith.constant 0 : i32
    return %arg0, %c0_i32, %c0_i32_0 : i32, i32, i32
  }
}

</mosaic_0001>

<bundles_post_ra>
// kernel: tpu_custom_call.1
= control target key start
LH: loop header
LB: loop body
LE: loop exit
PB: predicated region body
PF: predicated region fallthrough
CT: control target
= control target key end

     0   :  { %6 = vsyncpa [#allocation3], 0  ;;  %s153_s6 = smov [#allocation2]   ;;  %s243_s0 = inlined_call_operand.hbm [shape: f32[8,16,16], index: 0, kind: input, shape index: {}]   ;;  %s244_s1 = inlined_call_operand.vmem [shape: f32[8,12,12], index: 1, kind: output, shape index: {}]  }
   0x1   :  { %s12_s7 = sshll.u32 %s153_s6, 4  ;;  %s129_s10 = scalar_lea.hbm %s243_s0, 2048  ;;  %s13_s7 = int_to_ptr.vmem [resolvable:$true] %s12_s7 }
   0x2   :  { %p130_p0 = scmp.ne.s32.totalorder %s243_s0, %s129_s10  ;;  %p133_p1 = scmp.lt.u32.totalorder %s129_s10, %s243_s0 }
   0x4   :  { %p135_p2 = pnand %p133_p1, %p130_p0 }
   0x6   :  { %138 = shalt.err (!%p135_p2)
}
   0x7   :  { %s139_s15 = scalar_lea.vmem %s13_s7, 2048  ;;  %p144_p4 = scmp.lt.s32.totalorder %s13_s7, %s13_s7 }
   0x8   :  { %p140_p3 = scmp.ne.s32.totalorder %s13_s7, %s139_s15  ;;  %p145_p5 = scmp.lt.s32.totalorder %s139_s15, %s139_s15 }
   0xa   :  { %p146_p6 = por %p145_p5, %p144_p4 }
   0xc   :  { %p147_p7 = pnand %p146_p6, %p140_p3 }
   0xe   :  { %150 = shalt.err (!%p147_p7)
}
   0xf   :  { %s154_s16 = smov 128   ;;  %s155_s17 = smov 8  }
  0x10   :  { %18 = dma.hbm_to_vmem [thread:$0]  %s243_s0, 2048, %s13_s7, [#allocation3], %s154_s16, %s154_s16, %s155_s17  }
  0x11   :  { %151 = dma.done.wait [#allocation3], 2048  }
  0x12   :  { %152 = vsyncadd [#allocation3], 4294965248  ;;  %v24_v0 = vld [vmem:[#allocation2 + $0x12] sm:$0xff]  ;;  %v22_v1 = vld [vmem:[#allocation2 + $0x2] sm:$0xff]  ;;  %s156_s20 = smov 126   ;;  %vm102_vm0 = vcmask 97280  }
  0x13   :  { %58 = vrot.lane.b32.xlu1 %v24_v0, %s156_s20  ;;  %54 = vrot.lane.b32.xlu0 %v22_v1, %s156_s20  ;;  %v25_v2 = vld [vmem:[#allocation2 + $0x1a] sm:$0xf]  ;;  %v23_v3 = vld [vmem:[#allocation2 + $0xa] sm:$0xf]  ;;  %v26_v5 = vld [vmem:[#allocation2 + $0x22] sm:$0xff]  ;;  %vm104_vm1 = vcmask 93184  }
  0x14   :  { %v27_v4 = vld [vmem:[#allocation2 + $0x2a] sm:$0xf]  ;;  %v29_v6 = vld [vmem:[#allocation2 + $0x3a] sm:$0xf]  ;;  %v28_v7 = vld [vmem:[#allocation2 + $0x32] sm:$0xff] }
  0x15   :  { %v31_v8 = vld [vmem:[#allocation2 + $0x4a] sm:$0xf]  ;;  %v30_v9 = vld [vmem:[#allocation2 + $0x42] sm:$0xff]  ;;  %v33_v10 = vld [vmem:[#allocation2 + $0x5a] sm:$0xf] }
  0x16   :  { %v32_v11 = vld [vmem:[#allocation2 + $0x52] sm:$0xff]  ;;  %v35_v12 = vld [vmem:[#allocation2 + $0x6a] sm:$0xf]  ;;  %v34_v13 = vld [vmem:[#allocation2 + $0x62] sm:$0xff] }
  0x17   :  { %60 = vrot.lane.b32.xlu1 %v25_v2, %s156_s20  ;;  %56 = vrot.lane.b32.xlu0 %v23_v3, %s156_s20  ;;  %v37_v14 = vld [vmem:[#allocation2 + $0x7a] sm:$0xf]  ;;  %v36_v15 = vld [vmem:[#allocation2 + $0x72] sm:$0xff] }
  0x1b   :  { %64 = vrot.lane.b32.xlu1 %v27_v4, %s156_s20  ;;  %62 = vrot.lane.b32.xlu0 %v26_v5, %s156_s20 }
  0x1f   :  { %68 = vrot.lane.b32.xlu1 %v29_v6, %s156_s20  ;;  %66 = vrot.lane.b32.xlu0 %v28_v7, %s156_s20 }
  0x23   :  { %72 = vrot.lane.b32.xlu1 %v31_v8, %s156_s20  ;;  %70 = vrot.lane.b32.xlu0 %v30_v9, %s156_s20 }
  0x27   :  { %76 = vrot.lane.b32.xlu1 %v33_v10, %s156_s20  ;;  %74 = vrot.lane.b32.xlu0 %v32_v11, %s156_s20 }
  0x2b   :  { %80 = vrot.lane.b32.xlu1 %v35_v12, %s156_s20  ;;  %78 = vrot.lane.b32.xlu0 %v34_v13, %s156_s20 }
  0x2f   :  { %84 = vrot.lane.b32.xlu1 %v37_v14, %s156_s20  ;;  %82 = vrot.lane.b32.xlu0 %v36_v15, %s156_s20 }
  0x85   :  { %v59_v16 = vpop.permute.xlu1 %58  ;;  %v55_v17 = vpop.permute.xlu0 %54 }
  0x86   :  { %106 = vst.msk [vmem:[%s244_s1 + $0x10] sm:$0xff] %vm102_vm0, %v59_v16  ;;  %103 = vst.msk [vmem:[%s244_s1] sm:$0xff] %vm102_vm0, %v55_v17 }
  0x89   :  { %v61_v18 = vpop.permute.xlu1 %60  ;;  %v57_v19 = vpop.permute.xlu0 %56 }
  0x8a   :  { %107 = vst.msk [vmem:[%s244_s1 + $0x18] sm:$0xf] %vm104_vm1, %v61_v18  ;;  %105 = vst.msk [vmem:[%s244_s1 + $0x8] sm:$0xf] %vm104_vm1, %v57_v19 }
  0x8d   :  { %v65_v20 = vpop.permute.xlu1 %64  ;;  %v63_v21 = vpop.permute.xlu0 %62 }
  0x8e   :  { %109 = vst.msk [vmem:[%s244_s1 + $0x28] sm:$0xf] %vm104_vm1, %v65_v20 }
  0x8f   :  { %108 = vst.msk [vmem:[%s244_s1 + $0x20] sm:$0xff] %vm102_vm0, %v63_v21 }
  0x91   :  { %v69_v22 = vpop.permute.xlu1 %68  ;;  %v67_v23 = vpop.permute.xlu0 %66 }
  0x92   :  { %111 = vst.msk [vmem:[%s244_s1 + $0x38] sm:$0xf] %vm104_vm1, %v69_v22 }
  0x93   :  { %110 = vst.msk [vmem:[%s244_s1 + $0x30] sm:$0xff] %vm102_vm0, %v67_v23 }
  0x95   :  { %v73_v24 = vpop.permute.xlu1 %72  ;;  %v71_v25 = vpop.permute.xlu0 %70 }
  0x96   :  { %113 = vst.msk [vmem:[%s244_s1 + $0x48] sm:$0xf] %vm104_vm1, %v73_v24 }
  0x97   :  { %112 = vst.msk [vmem:[%s244_s1 + $0x40] sm:$0xff] %vm102_vm0, %v71_v25 }
  0x99   :  { %v77_v26 = vpop.permute.xlu1 %76  ;;  %v75_v27 = vpop.permute.xlu0 %74 }
  0x9a   :  { %115 = vst.msk [vmem:[%s244_s1 + $0x58] sm:$0xf] %vm104_vm1, %v77_v26 }
  0x9b   :  { %114 = vst.msk [vmem:[%s244_s1 + $0x50] sm:$0xff] %vm102_vm0, %v75_v27 }
  0x9d   :  { %v81_v28 = vpop.permute.xlu1 %80  ;;  %v79_v29 = vpop.permute.xlu0 %78 }
  0x9e   :  { %117 = vst.msk [vmem:[%s244_s1 + $0x68] sm:$0xf] %vm104_vm1, %v81_v28 }
  0x9f   :  { %116 = vst.msk [vmem:[%s244_s1 + $0x60] sm:$0xff] %vm102_vm0, %v79_v29 }
  0xa1   :  { %v85_v30 = vpop.permute.xlu1 %84  ;;  %v83_v31 = vpop.permute.xlu0 %82 }
  0xa2   :  { %119 = vst.msk [vmem:[%s244_s1 + $0x78] sm:$0xf] %vm104_vm1, %v85_v30 }
  0xa3   :  { %118 = vst.msk [vmem:[%s244_s1 + $0x70] sm:$0xff] %vm102_vm0, %v83_v31 }
  0xa4   :  { %124 = vsyncpa [#allocation3], 1 }

</bundles_post_ra>
